<compile_context>
chip_gen: v7x
topology: tpu7x:2x2x1
jax: 0.10.0
libtpu: 0.0.40
codegen_flags: <defaults>
</compile_context>

<pallas_src>
import jax
import jax.numpy as jnp
from jax import lax
from jax.experimental import pallas as pl
from jax.experimental.pallas import tpu as pltpu


def _round_up(x: int, m: int) -> int:
    return ((x + m - 1) // m) * m


# ---------------------------------------------------------------------------
# Kernel 1: fused K/Q/V projection.
#   (tm, C) @ (C, 3*Hp) -> split in-register into three (tm, Hp) outputs.
# ---------------------------------------------------------------------------
def _proj_kernel(x_ref, w_ref, k_ref, q_ref, v_ref):
    hp = k_ref.shape[1]
    kqv = jnp.dot(x_ref[...], w_ref[...], preferred_element_type=jnp.float32)
    # Static, lane-aligned (multiples of 128) slices of the f32 result.
    k_ref[...] = kqv[:, 0 * hp:1 * hp].astype(k_ref.dtype)
    q_ref[...] = kqv[:, 1 * hp:2 * hp].astype(q_ref.dtype)
    v_ref[...] = kqv[:, 2 * hp:3 * hp].astype(v_ref.dtype)


# ---------------------------------------------------------------------------
# Kernel 2: causal flash attention with online softmax.
#   grid = (batch, q tiles, kv tiles); m/l/acc live in VMEM scratch.
# ---------------------------------------------------------------------------
def _flash_attn_kernel(q_ref, k_ref, v_ref, o_ref, m_sc, l_sc, acc_sc):
    qi = pl.program_id(1)
    ki = pl.program_id(2)
    tq = q_ref.shape[1]
    tk = k_ref.shape[1]

    @pl.when(ki == 0)
    def _init():
        m_sc[...] = jnp.full(m_sc.shape, -jnp.inf, dtype=m_sc.dtype)
        l_sc[...] = jnp.zeros(l_sc.shape, dtype=l_sc.dtype)
        acc_sc[...] = jnp.zeros(acc_sc.shape, dtype=acc_sc.dtype)

    q_start = qi * tq
    kv_start = ki * tk

    def scores():
        # Contract over the head dim directly -- no materialized k transpose.
        # Queries were pre-scaled by embedding_dim**-0.5 in the wrapper.
        return lax.dot_general(q_ref[0], k_ref[0], (((1,), (1,)), ((), ())),
                               preferred_element_type=jnp.float32)  # (tq, tk)

    def update(s):
        m_prev = m_sc[...]
        m_new = jnp.maximum(m_prev, jnp.max(s, axis=-1, keepdims=True))
        # Invariant: the ki == 0 tile always contains an unmasked column
        # (column 0), so m_new is finite for every row and exp(-inf - finite)
        # cleanly evaluates to 0 on the very first processed tile.
        alpha = jnp.exp(m_prev - m_new)
        p = jnp.exp(s - m_new)
        l_sc[...] = alpha * l_sc[...] + jnp.sum(p, axis=-1, keepdims=True)
        acc_sc[...] = alpha * acc_sc[...] + jnp.dot(
            p.astype(v_ref.dtype), v_ref[0], preferred_element_type=jnp.float32)
        m_sc[...] = m_new

    fully_unmasked = kv_start + (tk - 1) <= q_start

    # Tile entirely at/below the diagonal: no mask math at all.
    @pl.when(fully_unmasked)
    def _full():
        update(scores())

    # Tile straddling the diagonal: build the causal mask for this tile only.
    # Tiles entirely above the diagonal run neither branch (skipped; and their
    # K/V DMAs are avoided via the clamped index_map in the wrapper).
    @pl.when(jnp.logical_and(kv_start <= q_start + (tq - 1),
                             jnp.logical_not(fully_unmasked)))
    def _diag():
        s = scores()
        row = q_start + lax.broadcasted_iota(jnp.int32, (tq, tk), 0)
        col = kv_start + lax.broadcasted_iota(jnp.int32, (tq, tk), 1)
        update(jnp.where(col <= row, s, -jnp.inf))

    @pl.when(ki == pl.num_programs(2) - 1)
    def _finalize():
        # Exact reciprocal: runs once per q tile, cost negligible.
        inv_l = pl.reciprocal(l_sc[...], approx=False)
        o_ref[0] = (acc_sc[...] * inv_l).astype(o_ref.dtype)


# ---------------------------------------------------------------------------
# Tile selection helpers
# ---------------------------------------------------------------------------
def _flash_tiles(t: int) -> tuple[int, int]:
    """(tq, tk) flash tile sizes; tk is always a multiple of tq."""
    if t < 128:
        tt = _round_up(t, 8)
        return tt, tt
    kind = ""
    try:
        kind = jax.devices()[0].device_kind.lower()
    except Exception:
        pass
    if "v5" in kind or t < 256:
        return 128, 128          # v5e MXU is 4x128^2: 128 is the native shape.
    return 128, 256              # v6e/v7x MXU is 2x256^2: 256-wide kv tiles.


def _proj_m_tile(m: int) -> int:
    """Largest nice divisor of m (m is always a multiple of 8) to avoid any
    M-dim padding + slice copies of the k/q/v intermediates."""
    for tm in (512, 256, 128, 64, 32, 16, 8):
        if m >= tm and m % tm == 0:
            return tm
    return m


# ---------------------------------------------------------------------------
# Wrapper
# ---------------------------------------------------------------------------
def attention_head(x, w_key, w_query, w_value, *, compute_dtype=jnp.bfloat16):
    """Causal single-head attention.  x: (B, T, C); w_*: (C, H) -> (B, T, H).

    compute_dtype: MXU input dtype (default bf16, the native MXU dtype on
    v5e/v6e/v7x).  All accumulation and softmax math stay float32; pass
    jnp.float32 (or None) for a bit-accurate-but-slower f32 path.
    """
    b, t, c = x.shape
    h = w_key.shape[1]
    out_dtype = x.dtype
    mm_dtype = jnp.dtype(compute_dtype) if compute_dtype is not None else x.dtype

    hp = _round_up(h, 128)                 # lane-dense head dim

    def pad_w(w):
        return jnp.pad(w, ((0, 0), (0, hp - h)))

    # Pre-scale the query weight by embedding_dim**-0.5 (one tiny (C,H) mul)
    # instead of scaling the (T,T) scores inside the kernel.  The PyTorch
    # module scales by embedding_dim (not head_size).
    w_kqv = jnp.concatenate(
        [pad_w(w_key), pad_w(w_query * (float(c) ** -0.5)), pad_w(w_value)],
        axis=1).astype(mm_dtype)           # (C, 3*Hp)

    # Flash tile sizes and T padding (t_pad is a multiple of both tq and tk).
    tq, tk = _flash_tiles(t)
    t_pad = _round_up(t, tk)

    xp = x
    if t_pad != t:
        xp = jnp.pad(x, ((0, 0), (0, t_pad - t), (0, 0)))
    m = b * t_pad
    x2 = xp.reshape(m, c).astype(mm_dtype)
    tm = _proj_m_tile(m)

    # ---------------- fused projection: k, q, v as separate outputs ----------
    k, q, v = pl.pallas_call(
        _proj_kernel,
        out_shape=(
            jax.ShapeDtypeStruct((m, hp), mm_dtype),
            jax.ShapeDtypeStruct((m, hp), mm_dtype),
            jax.ShapeDtypeStruct((m, hp), mm_dtype),
        ),
        grid_spec=pltpu.PrefetchScalarGridSpec(
            num_scalar_prefetch=0,
            grid=(m // tm,),
            in_specs=[
                pl.BlockSpec((tm, c), lambda i: (i, 0)),
                pl.BlockSpec((c, 3 * hp), lambda i: (0, 0)),   # weights resident
            ],
            out_specs=(
                pl.BlockSpec((tm, hp), lambda i: (i, 0)),
                pl.BlockSpec((tm, hp), lambda i: (i, 0)),
                pl.BlockSpec((tm, hp), lambda i: (i, 0)),
            ),
        ),
        compiler_params=pltpu.CompilerParams(
            dimension_semantics=("parallel",)),
    )(x2, w_kqv)

    # Contiguous reshapes (no data movement).
    k = k.reshape(b, t_pad, hp)
    q = q.reshape(b, t_pad, hp)           # already scaled by C**-0.5
    v = v.reshape(b, t_pad, hp)

    # ---------------- flash attention ----------------
    nq = t_pad // tq
    nk = t_pad // tk

    def kv_index(bi, qi, ki):
        # Clamp to the last kv tile this q tile actually computes, so the
        # skipped (fully-masked) grid steps keep the same block index and
        # Pallas issues no new K/V DMA for them.
        last = ((qi + 1) * tq - 1) // tk
        return (bi, jnp.minimum(ki, last), 0)

    out = pl.pallas_call(
        _flash_attn_kernel,
        out_shape=jax.ShapeDtypeStruct((b, t_pad, hp), out_dtype),
        grid_spec=pltpu.PrefetchScalarGridSpec(
            num_scalar_prefetch=0,
            grid=(b, nq, nk),
            in_specs=[
                pl.BlockSpec((1, tq, hp), lambda bi, qi, ki: (bi, qi, 0)),
                pl.BlockSpec((1, tk, hp), kv_index),
                pl.BlockSpec((1, tk, hp), kv_index),
            ],
            out_specs=pl.BlockSpec((1, tq, hp), lambda bi, qi, ki: (bi, qi, 0)),
            scratch_shapes=[
                pltpu.VMEM((tq, 1), jnp.float32),    # running max  m
                pltpu.VMEM((tq, 1), jnp.float32),    # running sum  l
                pltpu.VMEM((tq, hp), jnp.float32),   # output accumulator
            ],
        ),
        compiler_params=pltpu.CompilerParams(
            dimension_semantics=("parallel", "parallel", "arbitrary")),
    )(q, k, v)

    return out[:, :t, :h]


def reference(x, w_key, w_query, w_value):
    b, t, c = x.shape
    k = x @ w_key
    q = x @ w_query
    v = x @ w_value
    wei = (q @ jnp.swapaxes(k, -1, -2)) * (c ** -0.5)
    mask = jnp.tril(jnp.ones((t, t), dtype=bool))
    wei = jnp.where(mask, wei, -jnp.inf)
    probs = jax.nn.softmax(wei, axis=-1)
    return probs @ v


if __name__ == "__main__":
    # Small shapes consistent with the module's forward.
    batch, seq_len, embedding_dim, head_size = 2, 8, 32, 16

    key = jax.random.PRNGKey(0)
    kx, kk, kq, kv_key = jax.random.split(key, 4)

    x = jax.random.normal(kx, (batch, seq_len, embedding_dim), dtype=jnp.float32)
    # Deterministic parameter init (mimics nn.Linear uniform init scale).
    bound = 1.0 / (embedding_dim ** 0.5)
    w_key = jax.random.uniform(kk, (embedding_dim, head_size), jnp.float32, -bound, bound)
    w_query = jax.random.uniform(kq, (embedding_dim, head_size), jnp.float32, -bound, bound)
    w_value = jax.random.uniform(kv_key, (embedding_dim, head_size), jnp.float32, -bound, bound)

    ref = reference(x, w_key, w_query, w_value)

    # f32 MXU-input path: bit-level agreement with the reference.
    out_f32 = attention_head(x, w_key, w_query, w_value, compute_dtype=jnp.float32)
    out_f32 = jax.block_until_ready(out_f32)
    assert out_f32.shape == (batch, seq_len, head_size)
    assert jnp.allclose(out_f32, ref, atol=1e-4, rtol=1e-4), "f32 path mismatch"

    # Default bf16 MXU-input path (accumulation and softmax stay f32): tolerance
    # bounded by bf16's ~0.4% relative precision on the matmul inputs.
    out = attention_head(x, w_key, w_query, w_value)
    out = jax.block_until_ready(out)
    assert out.shape == (batch, seq_len, head_size)
    assert jnp.allclose(out, ref, atol=2e-2, rtol=2e-2), "bf16 path mismatch"

    print("KERNEL_OK")
</pallas_src>

<mosaic_0001>
module attributes {stable_mosaic.version = 11 : i64} {
  func.func @_proj_kernel(%arg0: i32, %arg1: memref<16x32xf32, #tpu.memory_space<vmem>>, %arg2: memref<32x384xf32, #tpu.memory_space<vmem>>, %arg3: memref<16x128xf32, #tpu.memory_space<vmem>>, %arg4: memref<16x128xf32, #tpu.memory_space<vmem>>, %arg5: memref<16x128xf32, #tpu.memory_space<vmem>>) attributes {dimension_semantics = [#tpu.dimension_semantics<parallel>], iteration_bounds = array<i64: 1>, scalar_prefetch = 0 : i64, scratch_operands = 0 : i64, tpu.core_type = #tpu.core_type<tc>, window_params = [{transform_indices = @transform_0, window_bounds = array<i64: 16, 32>}, {pipeline_mode = #tpu.pipeline_mode<synchronous>, transform_indices = @transform_1, window_bounds = array<i64: 32, 384>}, {transform_indices = @transform_2, window_bounds = array<i64: 16, 128>}, {transform_indices = @transform_3, window_bounds = array<i64: 16, 128>}, {transform_indices = @transform_4, window_bounds = array<i64: 16, 128>}]} {
    %c0 = arith.constant 0 : index
    %c0_0 = arith.constant 0 : index
    %0 = vector.load %arg1[%c0, %c0_0] : memref<16x32xf32, #tpu.memory_space<vmem>>, vector<16x32xf32>
    %c0_1 = arith.constant 0 : index
    %c0_2 = arith.constant 0 : index
    %1 = vector.load %arg2[%c0_1, %c0_2] : memref<32x384xf32, #tpu.memory_space<vmem>>, vector<32x384xf32>
    %cst = arith.constant dense<0.000000e+00> : vector<16x384xf32>
    %2 = tpu.matmul %0, %1, %cst {dimension_numbers = #tpu.dot_dimension_numbers<[1], [0], [0], [1], [0, 0, 1, 1], [], []>} : vector<16x32xf32>, vector<32x384xf32>, vector<16x384xf32> -> vector<16x384xf32>
    %3 = vector.extract_strided_slice %2 {offsets = [0, 0], sizes = [16, 128], strides = [1, 1]} : vector<16x384xf32> to vector<16x128xf32>
    %c0_3 = arith.constant 0 : index
    %c0_4 = arith.constant 0 : index
    %4 = vector.load %arg3[%c0_3, %c0_4] : memref<16x128xf32, #tpu.memory_space<vmem>>, vector<16x128xf32>
    tpu.vector_store %arg3[%c0_3, %c0_4], %3 {strides = array<i32>} : memref<16x128xf32, #tpu.memory_space<vmem>>, vector<16x128xf32>,
    %5 = vector.extract_strided_slice %2 {offsets = [0, 128], sizes = [16, 128], strides = [1, 1]} : vector<16x384xf32> to vector<16x128xf32>
    %c0_5 = arith.constant 0 : index
    %c0_6 = arith.constant 0 : index
    %6 = vector.load %arg4[%c0_5, %c0_6] : memref<16x128xf32, #tpu.memory_space<vmem>>, vector<16x128xf32>
    tpu.vector_store %arg4[%c0_5, %c0_6], %5 {strides = array<i32>} : memref<16x128xf32, #tpu.memory_space<vmem>>, vector<16x128xf32>,
    %7 = vector.extract_strided_slice %2 {offsets = [0, 256], sizes = [16, 128], strides = [1, 1]} : vector<16x384xf32> to vector<16x128xf32>
    %c0_7 = arith.constant 0 : index
    %c0_8 = arith.constant 0 : index
    %8 = vector.load %arg5[%c0_7, %c0_8] : memref<16x128xf32, #tpu.memory_space<vmem>>, vector<16x128xf32>
    tpu.vector_store %arg5[%c0_7, %c0_8], %7 {strides = array<i32>} : memref<16x128xf32, #tpu.memory_space<vmem>>, vector<16x128xf32>,
    return
  }
  func.func @transform_0(%arg0: i32) -> (i32, i32) {
    %c0_i32 = arith.constant 0 : i32
    %c0_i32_0 = arith.constant 0 : i32
    return %arg0, %c0_i32 : i32, i32
  }
  func.func @transform_1(%arg0: i32) -> (i32, i32) {
    %c0_i32 = arith.constant 0 : i32
    %c0_i32_0 = arith.constant 0 : i32
    %c0_i32_1 = arith.constant 0 : i32
    return %c0_i32, %c0_i32_0 : i32, i32
  }
  func.func @transform_2(%arg0: i32) -> (i32, i32) {
    %c0_i32 = arith.constant 0 : i32
    %c0_i32_0 = arith.constant 0 : i32
    return %arg0, %c0_i32 : i32, i32
  }
  func.func @transform_3(%arg0: i32) -> (i32, i32) {
    %c0_i32 = arith.constant 0 : i32
    %c0_i32_0 = arith.constant 0 : i32
    return %arg0, %c0_i32 : i32, i32
  }
  func.func @transform_4(%arg0: i32) -> (i32, i32) {
    %c0_i32 = arith.constant 0 : i32
    %c0_i32_0 = arith.constant 0 : i32
    return %arg0, %c0_i32 : i32, i32
  }
}

</mosaic_0001>

<bundles_post_ra>
// kernel: tpu_custom_call.1
= control target key start
LH: loop header
LB: loop body
LE: loop exit
PB: predicated region body
PF: predicated region fallthrough
CT: control target
= control target key end

     0   :  { %10 = vsyncpa [#allocation3], 0  ;;  %s562_s0 = inlined_call_operand.hbm [shape: f32[16,32], index: 0, kind: input, shape index: {}]   ;;  %s563_s1 = inlined_call_operand.hbm [shape: f32[32,384], index: 1, kind: input, shape index: {}]   ;;  %s564_s2 = inlined_call_operand.hbm [shape: f32[16,128], index: 2, kind: output, shape index: {0}]   ;;  %s565_s3 = inlined_call_operand.hbm [shape: f32[16,128], index: 3, kind: output, shape index: {1}]   ;;  %s566_s4 = inlined_call_operand.hbm [shape: f32[16,128], index: 4, kind: output, shape index: {2}]  }
   0x1   :  { %11 = vsyncpa [#allocation6], 0 }
   0x2   :  { %12 = vsyncpa [#allocation4], 0 }
   0x3   :  { %13 = vsyncpa [#allocation9], 0  ;;  %s437_s15 = smov [#allocation2]   ;;  %s319_s19 = scalar_lea.hbm %s562_s0, 256 }
   0x4   :  { %s19_s16 = sshll.u32 %s437_s15, 4  ;;  %p320_p0 = scmp.ne.s32.totalorder %s562_s0, %s319_s19  ;;  %s20_s16 = int_to_ptr.vmem [resolvable:$true] %s19_s16 }
   0x5   :  { %p323_p1 = scmp.lt.u32.totalorder %s319_s19, %s562_s0 }
   0x7   :  { %p325_p2 = pnand %p323_p1, %p320_p0 }
   0x9   :  { %328 = shalt.err (!%p325_p2)
}
   0xa   :  { %s329_s24 = scalar_lea.vmem %s20_s16, 256  ;;  %p334_p4 = scmp.lt.s32.totalorder %s20_s16, %s20_s16 }
   0xb   :  { %p330_p3 = scmp.ne.s32.totalorder %s20_s16, %s329_s24  ;;  %p335_p5 = scmp.lt.s32.totalorder %s329_s24, %s329_s24 }
   0xd   :  { %p336_p6 = por %p335_p5, %p334_p4 }
   0xf   :  { %p337_p7 = pnand %p336_p6, %p330_p3 }
  0x11   :  { %340 = shalt.err (!%p337_p7)
}
  0x12   :  { %s438_s25 = smov 128   ;;  %s439_s26 = smov 8  }
  0x13   :  { %25 = dma.hbm_to_vmem [thread:$0]  %s562_s0, 256, %s20_s16, [#allocation3], %s438_s25, %s438_s25, %s439_s26  }
  0x14   :  { %s440_s29 = smov [#allocation5]   ;;  %s341_s7 = scalar_lea.hbm %s563_s1, 1536 }
  0x15   :  { %s31_s30 = sshll.u32 %s440_s29, 4  ;;  %p342_p8 = scmp.ne.s32.totalorder %s563_s1, %s341_s7  ;;  %s32_s30 = int_to_ptr.vmem [resolvable:$true] %s31_s30 }
  0x16   :  { %p345_p9 = scmp.lt.u32.totalorder %s341_s7, %s563_s1 }
  0x18   :  { %p347_p10 = pnand %p345_p9, %p342_p8 }
  0x1a   :  { %350 = shalt.err (!%p347_p10)
}
  0x1b   :  { %s351_s12 = scalar_lea.vmem %s32_s30, 1536  ;;  %p356_p12 = scmp.lt.s32.totalorder %s32_s30, %s32_s30 }
  0x1c   :  { %p352_p11 = scmp.ne.s32.totalorder %s32_s30, %s351_s12  ;;  %p357_p13 = scmp.lt.s32.totalorder %s351_s12, %s351_s12 }
  0x1e   :  { %p358_p0 = por %p357_p13, %p356_p12 }
  0x20   :  { %p359_p1 = pnand %p358_p0, %p352_p11 }
  0x22   :  { %362 = shalt.err (!%p359_p1)
}
  0x23   :  { %s441_s0 = smov 384   ;;  %s442_s13 = smov 24  }
  0x24   :  { %37 = dma.hbm_to_vmem [thread:$0]  %s563_s1, 1536, %s32_s30, [#allocation6], %s441_s0, %s441_s0, %s442_s13  }
  0x25   :  { %429 = dma.done.wait [#allocation3], 256  }
  0x26   :  { %430 = vsyncadd [#allocation3], 4294967040 }
  0x27   :  { %431 = dma.done.wait [#allocation6], 1536  }
  0x28   :  { %432 = vsyncadd [#allocation6], 4294965760  ;;  %v443_v0 = vmov 0.0   ;;  %v47_v1 = vld [vmem:[#allocation5 + $0x8] sm:$0xff]  ;;  %v50_v2 = vld [vmem:[#allocation5 + $0x20] sm:$0xff]  ;;  %vm58_vm0 = vcmask 261120  }
  0x29   :  { %129 = vmatprep.mubr.f32.mxu0 %v443_v0  ;;  %v46_v3 = vld [vmem:[#allocation5] sm:$0xff]  ;;  %v293_v4 = vpack.c.bf16 %v50_v2, %v47_v1  ;;  %v49_v5 = vld [vmem:[#allocation5 + $0x18] sm:$0xff]  ;;  %v56_v7 = vld [vmem:[#allocation5 + $0x50] sm:$0xff]  ;;  %s444_s1 = smov [#allocation7]   ;;  %s445_s17 = smov [#allocation8]  }
  0x2a   :  { %v53_v6 = vld [vmem:[#allocation5 + $0x38] sm:$0xff]  ;;  %v295_v8 = vpack.c.bf16 %v49_v5, %v46_v3  ;;  %v48_v10 = vld [vmem:[#allocation5 + $0x10] sm:$0xff]  ;;  %v51_v11 = vld [vmem:[#allocation5 + $0x28] sm:$0xff]  ;;  %s228_s16 = sshll.u32 %s444_s1, 4  ;;  %s240_s18 = sshll.u32 %s445_s17, 4  ;;  %s229_s16 = int_to_ptr.vmem [resolvable:$true] %s228_s16  ;;  %s503_s18 = int_to_ptr.vmem [resolvable:$true] %s240_s18 }
  0x2b   :  { %v297_v9 = vpack.c.bf16 %v56_v7, %v53_v6  ;;  %v52_v12 = vld [vmem:[#allocation5 + $0x30] sm:$0xff]  ;;  %294 = vmatprep.subr.bf16.mxu0 %v293_v4  ;;  %v301_v13 = vpack.c.bf16 %v51_v11, %v48_v10  ;;  %v55_v14 = vld [vmem:[#allocation5 + $0x48] sm:$0xff]  ;;  %v54_v16 = vld [vmem:[#allocation5 + $0x40] sm:$0xff]  ;;  %s446_s19 = smov [#allocation10]   ;;  %s363_s21 = scalar_lea.vmem %s229_s16, 256 }
  0x2c   :  { %v44_v15 = vld [vmem:[#allocation2] sm:$0xff]  ;;  %296 = vmatpush1.bf16.msra.mxu0 %v295_v8  ;;  %v299_v17 = vpack.c.bf16 %v55_v14, %v52_v12  ;;  %v57_v18 = vld [vmem:[#allocation5 + $0x58] sm:$0xff]  ;;  %s252_s20 = sshll.u32 %s446_s19, 4  ;;  %p364_p2 = scmp.ne.s32.totalorder %s229_s16, %s363_s21  ;;  %s505_s20 = int_to_ptr.vmem [resolvable:$true] %s252_s20 }
  0x2d   :  { %290 = vmatprep.mubr.msk.f32.mxu1 %vm58_vm0, %v44_v15  ;;  %298 = vmatprep.subr.bf16.mxu0 %v297_v9  ;;  %v305_v19 = vpack.c.bf16 %v57_v18, %v54_v16  ;;  %v45_v20 = vld [vmem:[#allocation2 + $0x8] sm:$0xff]  ;;  %p368_p3 = scmp.lt.s32.totalorder %s229_s16, %s229_s16  ;;  %p369_p4 = scmp.lt.s32.totalorder %s363_s21, %s363_s21 }
  0x2e   :  { %302 = vmatprep.subr.bf16.mxu1 %v301_v13 }
  0x2f   :  { %304 = vmatpush3.bf16.msra.mxu1 %v301_v13  ;;  %p370_p5 = por %p369_p4, %p368_p3 }
  0x30   :  { %306 = vmatprep.subr.bf16.mxu1 %v305_v19  ;;  %300 = vmatpush1.bf16.msra.mxu0 %v299_v17 }
  0x31   :  { %p371_p6 = pnand %p370_p5, %p364_p2 }
  0x33   :  { %308 = vmatpush3.bf16.msra.mxu1 %v305_v19  ;;  %272 = vmatmul.mubr.msk.f32.vlgmr.msra.gmra.mrb[0].mxu0 %vm58_vm0, %v44_v15 }
  0x34   :  { %135 = vmatprep.mubr.f32.mxu0 %v443_v0 }
  0x36   :  { %291 = vmatmul.mubr.msk.f32.vlgmr.msra.gmra.mrb[0].mxu1 %vm58_vm0, %v45_v20 }
  0x37   :  { %273 = vmatmul.mubr.msk.f32.gmra.mrb[2].mxu0 %vm58_vm0, %v45_v20 }
 0x106   :  { %v131_v21 = vpop.f32.mrb[0].mxu0 }
 0x107   :  { %217 = vst [vmem:[#allocation7] sm:$0xff] %v131_v21  ;;  %v133_v22 = vpop.f32.mrb[1].mxu0 }
 0x108   :  { %219 = vst [vmem:[#allocation8] sm:$0xff] %v133_v22 }
 0x109   :  { %v292_v23 = vpop.f32.mrb[0].mxu1 }
 0x10a   :  { %222 = vst [vmem:[#allocation10 + $0x8] sm:$0xff] %v292_v23  ;;  %v208_v24 = vpop.f32.mrb[1].mxu1  ;;  %v137_v25 = vpop.f32.mrb[2].mxu0 }
 0x10b   :  { %221 = vst [vmem:[#allocation10] sm:$0xff] %v208_v24  ;;  %218 = vst [vmem:[#allocation7 + $0x8] sm:$0xff] %v137_v25  ;;  %v139_v26 = vpop.f32.mrb[3].mxu0 }
 0x10c   :  { %220 = vst [vmem:[#allocation8 + $0x8] sm:$0xff] %v139_v26 }
 0x10d   :  { %374 = shalt.err (!%p371_p6)
}
 0x10e   :  { %s375_s24 = scalar_lea.hbm %s564_s2, 256 }
 0x10f   :  { %p376_p7 = scmp.ne.s32.totalorder %s564_s2, %s375_s24  ;;  %p379_p8 = scmp.lt.u32.totalorder %s375_s24, %s564_s2 }
 0x111   :  { %p381_p9 = pnand %p379_p8, %p376_p7 }
 0x113   :  { %384 = shalt.err (!%p381_p9)
}
 0x114   :  { %234 = dma.vmem_to_hbm [thread:$0]  %s229_s16, 256, %s564_s2, [#allocation4], %s438_s25, %s438_s25, %s439_s26  }
 0x115   :  { %s385_s7 = scalar_lea.vmem %s503_s18, 256  ;;  %p390_p11 = scmp.lt.s32.totalorder %s503_s18, %s503_s18 }
 0x116   :  { %p386_p10 = scmp.ne.s32.totalorder %s503_s18, %s385_s7  ;;  %p391_p12 = scmp.lt.s32.totalorder %s385_s7, %s385_s7 }
 0x118   :  { %p392_p13 = por %p391_p12, %p390_p11 }
 0x11a   :  { %p393_p0 = pnand %p392_p13, %p386_p10 }
 0x11c   :  { %396 = shalt.err (!%p393_p0)
}
 0x11d   :  { %s397_s10 = scalar_lea.hbm %s565_s3, 256 }
 0x11e   :  { %p398_p1 = scmp.ne.s32.totalorder %s565_s3, %s397_s10  ;;  %p401_p2 = scmp.lt.u32.totalorder %s397_s10, %s565_s3 }
 0x120   :  { %p403_p3 = pnand %p401_p2, %p398_p1 }
 0x122   :  { %406 = shalt.err (!%p403_p3)
}
 0x123   :  { %246 = dma.vmem_to_hbm [thread:$0]  %s503_s18, 256, %s565_s3, [#allocation9], %s438_s25, %s438_s25, %s439_s26  }
 0x124   :  { %s407_s15 = scalar_lea.vmem %s505_s20, 256  ;;  %p412_p5 = scmp.lt.s32.totalorder %s505_s20, %s505_s20 }
 0x125   :  { %p408_p4 = scmp.ne.s32.totalorder %s505_s20, %s407_s15  ;;  %p413_p6 = scmp.lt.s32.totalorder %s407_s15, %s407_s15 }
 0x127   :  { %p414_p7 = por %p413_p6, %p412_p5 }
 0x129   :  { %p415_p8 = pnand %p414_p7, %p408_p4 }
 0x12b   :  { %418 = shalt.err (!%p415_p8)
}
 0x12c   :  { %s419_s17 = scalar_lea.hbm %s566_s4, 256 }
 0x12d   :  { %p420_p9 = scmp.ne.s32.totalorder %s566_s4, %s419_s17  ;;  %p423_p10 = scmp.lt.u32.totalorder %s419_s17, %s566_s4 }
 0x12f   :  { %p425_p11 = pnand %p423_p10, %p420_p9 }
 0x131   :  { %428 = shalt.err (!%p425_p11)
}
 0x132   :  { %258 = dma.vmem_to_hbm [thread:$0]  %s505_s20, 256, %s566_s4, [#allocation9], %s438_s25, %s438_s25, %s439_s26  }
 0x133   :  { %433 = dma.done.wait [#allocation4], 256  }
 0x134   :  { %434 = vsyncadd [#allocation4], 4294967040 }
 0x135   :  { %435 = dma.done.wait [#allocation9], 512  }
 0x136   :  { %436 = vsyncadd [#allocation9], 4294966784 }
 0x137   :  { %268 = vsyncpa [#allocation3], 1 }
 0x138   :  { %269 = vsyncpa [#allocation6], 1 }
 0x139   :  { %270 = vsyncpa [#allocation4], 1 }
 0x13a   :  { %271 = vsyncpa [#allocation9], 1 }

</bundles_post_ra>
